<compile_context>
chip_gen: v7x
topology: tpu7x:2x2x1
jax: 0.10.0
libtpu: 0.0.40
codegen_flags: <defaults>
</compile_context>

<pallas_src>
import functools
import math

import jax
import jax.numpy as jnp
from jax import lax
from jax.experimental import pallas as pl
from jax.experimental.pallas import tpu as pltpu


def _pe_add_dropout_kernel(x_ref, pe_ref, o_ref, *, p, seed, tile_r, lane_w):
    """One (tile_r, lane_w) tile: y = x + pe (pre-broadcast), then dropout."""
    y = x_ref[...] + pe_ref[...]  # pe_ref already full-tile -> plain VPU add.

    if p > 0.0:
        # TODO(synk): torch's exact dropout RNG stream cannot be reproduced;
        # only Bernoulli(p) + 1/(1-p) scaling semantics are matched.
        pid = pl.program_id(0).astype(jnp.uint32)
        rows = lax.broadcasted_iota(jnp.uint32, (tile_r, lane_w), 0)
        cols = lax.broadcasted_iota(jnp.uint32, (tile_r, lane_w), 1)
        idx = (pid * jnp.uint32(tile_r) + rows) * jnp.uint32(lane_w) + cols
        h = idx ^ jnp.uint32(seed & 0xFFFFFFFF)
        # murmur3-style finalizer to decorrelate neighbouring indices.
        h = h * jnp.uint32(0x9E3779B1)
        h = h ^ (h >> jnp.uint32(16))
        h = h * jnp.uint32(0x85EBCA6B)
        h = h ^ (h >> jnp.uint32(13))
        h = h * jnp.uint32(0xC2B2AE35)
        h = h ^ (h >> jnp.uint32(16))
        threshold = jnp.uint32(min(int(round(p * 4294967296.0)), 4294967295))
        keep = h >= threshold  # drop with probability ~p
        scale = jnp.float32(1.0 / (1.0 - p))
        y = jnp.where(keep, y * scale, jnp.float32(0.0))

    o_ref[...] = y


def make_positional_encoding_table(input_size, max_sequence):
    """Deterministic buffer init mirroring the PyTorch __init__ (plain JAX glue)."""
    even_seq = jnp.arange(0, input_size, 2, dtype=jnp.float32)
    position = jnp.arange(0, max_sequence, dtype=jnp.float32)[:, None]
    denom = jnp.power(jnp.float32(10000.0), even_seq / jnp.float32(input_size))
    pe = jnp.zeros((max_sequence, input_size), dtype=jnp.float32)
    pe = pe.at[:, 0::2].set(jnp.sin(position / denom))
    pe = pe.at[:, 1::2].set(jnp.cos(position / denom))
    return pe[None]  # (1, max_sequence, input_size)


def positional_encoding_forward(x, pe, dropout_p, seed=0, *, max_tile_rows=1024):
    """Equivalent of PositionalEncoding.forward(x) in training mode.

    x  : (batch, seq_len, d_model) float32
    pe : (1, max_sequence, d_model) float32 buffer
    """
    B, S, D = x.shape
    assert S < pe.shape[1], "forward indexes pe at row seq_len; needs seq_len < max_sequence"
    pe_row = pe[0, S]  # (D,)  — faithful `self.pe[:, x.size(1)]`

    n = B * S * D
    # Lane width: multiple of 128 (full vreg lanes) and of D (PE tiles exactly).
    lane_w = D * 128 // math.gcd(D, 128)
    rows = -(-n // lane_w)

    # Cap the block at ~2 MiB so double-buffered in+out (+ resident PE block)
    # stays well inside the scoped VMEM budget on all generations (incl. v7x).
    max_rows_by_vmem = max(8, ((2 * 1024 * 1024) // (lane_w * 4)) // 8 * 8)
    tile_cap = min(max_tile_rows, max_rows_by_vmem)
    tile_r = rows if rows <= tile_cap else tile_cap
    rows_pad = -(-rows // tile_r) * tile_r
    n_pad = rows_pad * lane_w

    x_flat = x.reshape(-1)
    if n_pad != n:
        x_flat = jnp.pad(x_flat, (0, n_pad - n))
    x2 = x_flat.reshape(rows_pad, lane_w)

    # Pre-broadcast the PE row to one full block (constant index_map -> stays
    # resident in VMEM; the kernel does a plain vreg-for-vreg add).
    pe_block = jnp.broadcast_to(jnp.tile(pe_row, lane_w // D), (tile_r, lane_w)).astype(x.dtype)

    kernel = functools.partial(
        _pe_add_dropout_kernel,
        p=float(dropout_p), seed=int(seed), tile_r=tile_r, lane_w=lane_w,
    )

    out2 = pl.pallas_call(
        kernel,
        out_shape=jax.ShapeDtypeStruct((rows_pad, lane_w), x.dtype),
        grid=(rows_pad // tile_r,),
        in_specs=[
            pl.BlockSpec((tile_r, lane_w), lambda i: (i, 0)),  # x tile (pipelined)
            pl.BlockSpec((tile_r, lane_w), lambda i: (0, 0)),  # PE block (resident)
        ],
        out_specs=pl.BlockSpec((tile_r, lane_w), lambda i: (i, 0)),
        compiler_params=pltpu.CompilerParams(
            dimension_semantics=("parallel",),
            vmem_limit_bytes=32 * 1024 * 1024,
        ),
    )(x2, pe_block)

    return out2.reshape(-1)[:n].reshape(B, S, D)


if __name__ == "__main__":
    # Small shapes consistent with the module: d_model=32, max_sequence=16,
    # batch=2, seq_len=8 (seq_len must be < max_sequence because the original
    # forward indexes pe at position seq_len).
    d_model = 32
    max_sequence = 16
    dropout_p = 0.1
    B, S = 2, 8

    key = jax.random.PRNGKey(0)
    x = jax.random.normal(key, (B, S, d_model), dtype=jnp.float32)
    pe = make_positional_encoding_table(d_model, max_sequence)

    out = positional_encoding_forward(x, pe, dropout_p, seed=0)
    out = jax.block_until_ready(out)

    assert out.shape == (B, S, d_model)
    # Kept elements must equal (x + pe_row) / (1 - p); dropped elements are 0.
    expected = (x + pe[:, S]) / (1.0 - dropout_p)
    kept = out != 0.0
    assert bool(jnp.all(jnp.abs(jnp.where(kept, out - expected, 0.0)) < 1e-5))
    drop_frac = 1.0 - float(jnp.mean(kept.astype(jnp.float32)))
    assert 0.0 <= drop_frac < 0.5

    print("KERNEL_OK")
</pallas_src>

<mosaic_0001>
module attributes {stable_mosaic.version = 11 : i64} {
  func.func @_pe_add_dropout_kernel(%arg0: i32, %arg1: memref<4x128xf32, #tpu.memory_space<vmem>>, %arg2: memref<4x128xf32, #tpu.memory_space<vmem>>, %arg3: memref<4x128xf32, #tpu.memory_space<vmem>>) attributes {dimension_semantics = [#tpu.dimension_semantics<parallel>], iteration_bounds = array<i64: 1>, scalar_prefetch = 0 : i64, scratch_operands = 0 : i64, tpu.core_type = #tpu.core_type<tc>, window_params = [{transform_indices = @transform_0, window_bounds = array<i64: 4, 128>}, {pipeline_mode = #tpu.pipeline_mode<synchronous>, transform_indices = @transform_1, window_bounds = array<i64: 4, 128>}, {transform_indices = @transform_2, window_bounds = array<i64: 4, 128>}]} {
    %c0 = arith.constant 0 : index
    %c0_0 = arith.constant 0 : index
    %0 = vector.load %arg1[%c0, %c0_0] : memref<4x128xf32, #tpu.memory_space<vmem>>, vector<4x128xf32>
    %c0_1 = arith.constant 0 : index
    %c0_2 = arith.constant 0 : index
    %1 = vector.load %arg2[%c0_1, %c0_2] : memref<4x128xf32, #tpu.memory_space<vmem>>, vector<4x128xf32>
    %2 = arith.addf %0, %1 : vector<4x128xf32>
    %3 = tpu.iota {dimensions = array<i32: 0>} : vector<4x128xi32>
    %4 = tpu.iota {dimensions = array<i32: 1>} : vector<4x128xi32>
    %c4_i32 = arith.constant 4 : i32
    %5 = arith.muli %arg0, %c4_i32 : i32
    %6 = vector.broadcast %5 : i32 to vector<4x128xi32>
    %7 = arith.addi %6, %3 : vector<4x128xi32>
    %c128_i32 = arith.constant 128 : i32
    %8 = vector.broadcast %c128_i32 : i32 to vector<4x128xi32>
    %9 = arith.muli %7, %8 : vector<4x128xi32>
    %10 = arith.addi %9, %4 : vector<4x128xi32>
    %c0_i32 = arith.constant 0 : i32
    %11 = vector.broadcast %c0_i32 : i32 to vector<4x128xi32>
    %12 = arith.xori %10, %11 : vector<4x128xi32>
    %c-1640531535_i32 = arith.constant -1640531535 : i32
    %13 = vector.broadcast %c-1640531535_i32 : i32 to vector<4x128xi32>
    %14 = arith.muli %12, %13 : vector<4x128xi32>
    %c16_i32 = arith.constant 16 : i32
    %15 = vector.broadcast %c16_i32 : i32 to vector<4x128xi32>
    %16 = arith.shrui %14, %15 : vector<4x128xi32>
    %17 = arith.xori %14, %16 : vector<4x128xi32>
    %c-2048144789_i32 = arith.constant -2048144789 : i32
    %18 = vector.broadcast %c-2048144789_i32 : i32 to vector<4x128xi32>
    %19 = arith.muli %17, %18 : vector<4x128xi32>
    %c13_i32 = arith.constant 13 : i32
    %20 = vector.broadcast %c13_i32 : i32 to vector<4x128xi32>
    %21 = arith.shrui %19, %20 : vector<4x128xi32>
    %22 = arith.xori %19, %21 : vector<4x128xi32>
    %c-1028477387_i32 = arith.constant -1028477387 : i32
    %23 = vector.broadcast %c-1028477387_i32 : i32 to vector<4x128xi32>
    %24 = arith.muli %22, %23 : vector<4x128xi32>
    %c16_i32_3 = arith.constant 16 : i32
    %25 = vector.broadcast %c16_i32_3 : i32 to vector<4x128xi32>
    %26 = arith.shrui %24, %25 : vector<4x128xi32>
    %27 = arith.xori %24, %26 : vector<4x128xi32>
    %c429496730_i32 = arith.constant 429496730 : i32
    %28 = vector.broadcast %c429496730_i32 : i32 to vector<4x128xi32>
    %29 = arith.cmpi uge, %27, %28 : vector<4x128xi32>
    %cst = arith.constant 1.11111116 : f32
    %30 = vector.broadcast %cst : f32 to vector<4x128xf32>
    %31 = arith.mulf %2, %30 : vector<4x128xf32>
    %cst_4 = arith.constant 0.000000e+00 : f32
    %32 = vector.broadcast %cst_4 : f32 to vector<4x128xf32>
    %33 = arith.select %29, %31, %32 : vector<4x128xi1>, vector<4x128xf32>
    %c0_5 = arith.constant 0 : index
    %c0_6 = arith.constant 0 : index
    %34 = vector.load %arg3[%c0_5, %c0_6] : memref<4x128xf32, #tpu.memory_space<vmem>>, vector<4x128xf32>
    tpu.vector_store %arg3[%c0_5, %c0_6], %33 {strides = array<i32>} : memref<4x128xf32, #tpu.memory_space<vmem>>, vector<4x128xf32>,
    return
  }
  func.func @transform_0(%arg0: i32) -> (i32, i32) {
    %c0_i32 = arith.constant 0 : i32
    %c0_i32_0 = arith.constant 0 : i32
    return %arg0, %c0_i32 : i32, i32
  }
  func.func @transform_1(%arg0: i32) -> (i32, i32) {
    %c0_i32 = arith.constant 0 : i32
    %c0_i32_0 = arith.constant 0 : i32
    %c0_i32_1 = arith.constant 0 : i32
    return %c0_i32, %c0_i32_0 : i32, i32
  }
  func.func @transform_2(%arg0: i32) -> (i32, i32) {
    %c0_i32 = arith.constant 0 : i32
    %c0_i32_0 = arith.constant 0 : i32
    return %arg0, %c0_i32 : i32, i32
  }
}

</mosaic_0001>

<bundles_post_ra>
// kernel: tpu_custom_call.1
= control target key start
LH: loop header
LB: loop body
LE: loop exit
PB: predicated region body
PF: predicated region fallthrough
CT: control target
= control target key end

     0   :  { %7 = vsyncpa [#allocation3], 0  ;;  %s206_s0 = inlined_call_operand.hbm [shape: f32[4,128], index: 0, kind: input, shape index: {}]   ;;  %s207_s1 = inlined_call_operand.hbm [shape: f32[4,128], index: 1, kind: input, shape index: {}]   ;;  %s208_s2 = inlined_call_operand.hbm [shape: f32[4,128], index: 2, kind: output, shape index: {}]  }
   0x1   :  { %8 = vsyncpa [#allocation6], 0 }
   0x2   :  { %9 = vsyncpa [#allocation4], 0  ;;  %s152_s9 = smov [#allocation2]   ;;  %s153_s11 = smov [#allocation5]  }
   0x3   :  { %s16_s10 = sshll.u32 %s152_s9, 4  ;;  %s26_s12 = sshll.u32 %s153_s11, 4  ;;  %s17_s10 = int_to_ptr.vmem [resolvable:$true] %s16_s10  ;;  %s27_s12 = int_to_ptr.vmem [resolvable:$true] %s26_s12 }
   0x4   :  { %s80_s15 = scalar_lea.hbm %s206_s0, 64 }
   0x5   :  { %p81_p0 = scmp.ne.s32.totalorder %s206_s0, %s80_s15  ;;  %p84_p1 = scmp.lt.u32.totalorder %s80_s15, %s206_s0 }
   0x7   :  { %p86_p2 = pnand %p84_p1, %p81_p0 }
   0x9   :  { %89 = shalt.err (!%p86_p2)
}
   0xa   :  { %s90_s20 = scalar_lea.vmem %s17_s10, 64  ;;  %p95_p4 = scmp.lt.s32.totalorder %s17_s10, %s17_s10 }
   0xb   :  { %p91_p3 = scmp.ne.s32.totalorder %s17_s10, %s90_s20  ;;  %p96_p5 = scmp.lt.s32.totalorder %s90_s20, %s90_s20 }
   0xd   :  { %p97_p6 = por %p96_p5, %p95_p4 }
   0xf   :  { %p98_p7 = pnand %p97_p6, %p91_p3 }
  0x11   :  { %101 = shalt.err (!%p98_p7)
}
  0x12   :  { %19 = dma.hbm_to_vmem [thread:$0]  %s206_s0, 64, %s17_s10, [#allocation3]  }
  0x13   :  { %s102_s25 = scalar_lea.hbm %s207_s1, 64 }
  0x14   :  { %p103_p8 = scmp.ne.s32.totalorder %s207_s1, %s102_s25  ;;  %p106_p9 = scmp.lt.u32.totalorder %s102_s25, %s207_s1 }
  0x16   :  { %p108_p10 = pnand %p106_p9, %p103_p8 }
  0x18   :  { %111 = shalt.err (!%p108_p10)
}
  0x19   :  { %s112_s30 = scalar_lea.vmem %s27_s12, 64  ;;  %p117_p12 = scmp.lt.s32.totalorder %s27_s12, %s27_s12 }
  0x1a   :  { %p113_p11 = scmp.ne.s32.totalorder %s27_s12, %s112_s30  ;;  %p118_p13 = scmp.lt.s32.totalorder %s112_s30, %s112_s30 }
  0x1c   :  { %p119_p0 = por %p118_p13, %p117_p12 }
  0x1e   :  { %p120_p1 = pnand %p119_p0, %p113_p11 }
  0x20   :  { %123 = shalt.err (!%p120_p1)
}
  0x21   :  { %29 = dma.hbm_to_vmem [thread:$0]  %s207_s1, 64, %s27_s12, [#allocation6]  }
  0x22   :  { %146 = dma.done.wait [#allocation3], 64  }
  0x23   :  { %147 = vsyncadd [#allocation3], 4294967232 }
  0x24   :  { %148 = dma.done.wait [#allocation6], 64  }
  0x25   :  { %149 = vsyncadd [#allocation6], 4294967232  ;;  %v39_v0 = vlaneseq  ;;  %v36_v9 = vld [vmem:[#allocation2] sm:$0xf]  ;;  %v37_v10 = vld [vmem:[#allocation5] sm:$0xf] }
  0x26   :  { %v38_v13 = vadd.f32 %v37_v10, %v36_v9  ;;  %s154_s1 = smov [#allocation7]  }
  0x27   :  { %v40_v1 = vshrl.u32 %v39_v0, 7  ;;  %v42_v2 = vand.u32 127, %v39_v0  ;;  %s67_s4 = sshll.u32 %s154_s1, 4  ;;  %s68_s4 = int_to_ptr.vmem [resolvable:$true] %s67_s4 }
  0x28   :  { %v58_v16 = vmul.f32 1.1111112, %v38_v13  ;;  %s124_s5 = scalar_lea.vmem %s68_s4, 64  ;;  %p129_p3 = scmp.lt.s32.totalorder %s68_s4, %s68_s4 }
  0x29   :  { %v46_v3 = vmul.u32 128, %v40_v1  ;;  %p125_p2 = scmp.ne.s32.totalorder %s68_s4, %s124_s5  ;;  %p130_p4 = scmp.lt.s32.totalorder %s124_s5, %s124_s5 }
  0x2b   :  { %v47_v4 = vadd.s32 %v46_v3, %v42_v2  ;;  %p131_p5 = por %p130_p4, %p129_p3 }
  0x2d   :  { %v48_v5 = vmul.u32 2654435761, %v47_v4  ;;  %p132_p6 = pnand %p131_p5, %p125_p2 }
  0x2f   :  { %v49_v6 = vshrl.u32 %v48_v5, 16 }
  0x31   :  { %v50_v7 = vxor.u32 %v49_v6, %v48_v5 }
  0x33   :  { %v51_v8 = vmul.u32 2246822507, %v50_v7 }
  0x35   :  { %v52_v11 = vshrl.u32 %v51_v8, 13 }
  0x37   :  { %v53_v12 = vxor.u32 %v52_v11, %v51_v8 }
  0x39   :  { %v54_v14 = vmul.u32 3266489909, %v53_v12 }
  0x3b   :  { %v55_v15 = vshrl.u32 %v54_v14, 16 }
  0x3d   :  { %v56_v17 = vxor.u32 %v55_v15, %v54_v14 }
  0x3f   :  { %vm57_vm0 = vcmp.ge.u32.totalorder %v56_v17, 429496730 }
  0x40   :  { %v59_v18 = vsel %vm57_vm0, %v58_v16, 0.0 }
  0x41   :  { %60 = vst [vmem:[#allocation7] sm:$0xf] %v59_v18 }
  0x42   :  { %135 = shalt.err (!%p132_p6)
}
  0x43   :  { %s136_s8 = scalar_lea.hbm %s208_s2, 64 }
  0x44   :  { %p137_p7 = scmp.ne.s32.totalorder %s208_s2, %s136_s8  ;;  %p140_p8 = scmp.lt.u32.totalorder %s136_s8, %s208_s2 }
  0x46   :  { %p142_p9 = pnand %p140_p8, %p137_p7 }
  0x48   :  { %145 = shalt.err (!%p142_p9)
}
  0x49   :  { %70 = dma.vmem_to_hbm [thread:$0]  %s68_s4, 64, %s208_s2, [#allocation4]  }
  0x4a   :  { %150 = dma.done.wait [#allocation4], 64  }
  0x4b   :  { %151 = vsyncadd [#allocation4], 4294967232 }
  0x4c   :  { %74 = vsyncpa [#allocation3], 1 }
  0x4d   :  { %75 = vsyncpa [#allocation6], 1 }
  0x4e   :  { %76 = vsyncpa [#allocation4], 1 }

</bundles_post_ra>
